<compile_context>
chip_gen: v7x
topology: tpu7x:2x2x1
jax: 0.10.0
libtpu: 0.0.40
codegen_flags: <defaults>
</compile_context>

<pallas_src>
import jax
import jax.numpy as jnp
from jax.experimental import pallas as pl
from jax.experimental.pallas import tpu as pltpu

# ---------------- model hyperparameters (small, deterministic) --------------
B = 2          # batch
T = 8          # sequence length
D_MODEL = 32   # d_model
N_HEADS = 4    # n_heads
D_K = D_MODEL // N_HEADS
D_FF = 64      # feed-forward inner dim
LN_EPS = 1e-5  # PyTorch LayerNorm default

BT = B * T     # flattened tokens

# ---------------- packed parameter slab layout (f32, shape (64, 320)) -------
#   rows 0:32 , cols   0: 96  -> [Wq*scale | Wk | Wv]
#   rows 0:32 , cols  96:128  -> Wo
#   rows 0:32 , cols 128:192  -> W1
#   rows 0:64 , cols 192:224  -> W2
#   rows 32:36, cols   0: 96  -> packed bias/LN vectors (4 rows)
#   rows 0:NR , cols 224:288  -> additive attention mask bias (0 / -1e30)
#   rows 0:NR , cols 288:320  -> per-head 0/1 lane mask for k/v
SLAB_ROWS = 64
SLAB_COLS = 320
VEC_ROW = 32
MASK_COL = 224
HM_COL = 288
NEG_BIG = -1e30


def _layernorm(x, gamma, beta):
    mu = jnp.mean(x, axis=-1, keepdims=True)
    var = jnp.mean((x - mu) ** 2, axis=-1, keepdims=True)
    return (x - mu) * jax.lax.rsqrt(var + LN_EPS) * gamma + beta


def transformer_block_kernel(x_ref, w_ref, o_ref):
    tl = x_ref.shape[0]          # tokens handled by this grid step
    nr = N_HEADS * tl            # packed (head, token) rows

    x = x_ref[...]                                       # (tl, 32)

    # ---- parameter regions (static, 8-aligned sublane offsets) -------------
    w_qkv = w_ref[0:D_MODEL, 0:3 * D_MODEL]              # (32, 96)
    w_o = w_ref[0:D_MODEL, 96:128]                       # (32, 32)
    w_1 = w_ref[0:D_MODEL, 128:192]                      # (32, 64)
    w_2 = w_ref[0:D_FF, 192:224]                         # (64, 32)
    mask_bias = w_ref[0:nr, MASK_COL:MASK_COL + nr]      # (nr, nr) additive 0/-1e30
    head_mask = w_ref[0:nr, HM_COL:HM_COL + D_MODEL]     # (nr, 32) 0/1

    vecs = w_ref[VEC_ROW:VEC_ROW + 4, 0:96]              # (4, 96)
    b_qkv = vecs[0:1, :]                                 # [bq*scale | bk | bv]
    bo = vecs[1:2, 0:D_MODEL]
    g1 = vecs[1:2, D_MODEL:2 * D_MODEL]
    be1 = vecs[1:2, 2 * D_MODEL:3 * D_MODEL]
    g2 = vecs[2:3, 0:D_MODEL]
    be2 = vecs[2:3, D_MODEL:2 * D_MODEL]
    bf2 = vecs[2:3, 2 * D_MODEL:3 * D_MODEL]
    bf1 = vecs[3:4, 0:D_FF]

    # ---------------- pre-norm self-attention -------------------------------
    h = _layernorm(x, g1, be1)                           # (tl, 32)
    qkv = jnp.dot(h, w_qkv, preferred_element_type=jnp.float32) + b_qkv   # (tl, 96)
    q = qkv[:, 0:D_MODEL]                                # 1/sqrt(d_k) folded into Wq/bq
    k = qkv[:, D_MODEL:2 * D_MODEL]
    v = qkv[:, 2 * D_MODEL:3 * D_MODEL]

    # Replicate tokens once per head along sublanes (aligned copies), zero k/v
    # outside each head's lane window: one block-diagonal MXU pass computes every
    # head's scores, the precomputed additive bias does head/batch/causal masking.
    qrep = jnp.concatenate([q] * N_HEADS, axis=0)        # (nr, 32)
    kblk = jnp.concatenate([k] * N_HEADS, axis=0) * head_mask
    vblk = jnp.concatenate([v] * N_HEADS, axis=0) * head_mask

    scores = jax.lax.dot_general(qrep, kblk, (((1,), (1,)), ((), ())),
                                 preferred_element_type=jnp.float32)      # (nr, nr)
    scores = scores + mask_bias

    m = jnp.max(scores, axis=-1, keepdims=True)
    p = jnp.exp(scores - m)                              # masked entries underflow to 0
    denom = jnp.sum(p, axis=-1, keepdims=True)

    av = jnp.dot(p, vblk, preferred_element_type=jnp.float32)             # (nr, 32)
    inv = pl.reciprocal(denom, approx=True)
    inv = inv * (2.0 - denom * inv)                      # one Newton step -> ~f32 accuracy
    av = av * inv                                        # normalize AFTER the AV matmul

    # Fold heads back: each lane column belongs to exactly one head (others are 0),
    # so summing the per-head sublane blocks reconstructs the concatenated output.
    attn_cat = av[0:tl]
    for hh in range(1, N_HEADS):
        attn_cat = attn_cat + av[hh * tl:(hh + 1) * tl]  # (tl, 32)

    attn_out = jnp.dot(attn_cat, w_o, preferred_element_type=jnp.float32) + bo
    x1 = x + attn_out                                    # residual; dropout1 = identity

    # ---------------- pre-norm feed-forward ---------------------------------
    h2 = _layernorm(x1, g2, be2)
    f1 = jnp.dot(h2, w_1, preferred_element_type=jnp.float32) + bf1
    f1 = jnp.maximum(f1, 0.0)                            # ReLU
    f2 = jnp.dot(f1, w_2, preferred_element_type=jnp.float32) + bf2
    o_ref[...] = x1 + f2                                 # residual; dropout2 = identity


def pack_params(params, tl):
    """Pack all 16 tensors + masks into one (64, 320) f32 slab (single DMA)."""
    (wq, bq, wk, bk, wv, bv, wo, bo,
     g1, be1, w1, bf1, w2, bf2, g2, be2) = params
    scale = 1.0 / (D_K ** 0.5)
    nr = N_HEADS * tl

    slab = jnp.zeros((SLAB_ROWS, SLAB_COLS), jnp.float32)
    slab = slab.at[0:D_MODEL, 0:3 * D_MODEL].set(
        jnp.concatenate([wq * scale, wk, wv], axis=1))
    slab = slab.at[0:D_MODEL, 96:128].set(wo)
    slab = slab.at[0:D_MODEL, 128:192].set(w1)
    slab = slab.at[0:D_FF, 192:224].set(w2)
    slab = slab.at[VEC_ROW + 0:VEC_ROW + 1, 0:96].set(
        jnp.concatenate([bq * scale, bk, bv], axis=1))
    slab = slab.at[VEC_ROW + 1:VEC_ROW + 2, 0:96].set(
        jnp.concatenate([bo, g1, be1], axis=1))
    slab = slab.at[VEC_ROW + 2:VEC_ROW + 3, 0:96].set(
        jnp.concatenate([g2, be2, bf2], axis=1))
    slab = slab.at[VEC_ROW + 3:VEC_ROW + 4, 0:D_FF].set(bf1)

    # Additive attention bias: rows/cols index (head, seq, token) within a block.
    r = jnp.arange(nr)
    ri, ci = r[:, None], r[None, :]
    same_head = (ri // tl) == (ci // tl)
    rtok, ctok = ri % tl, ci % tl
    same_seq = (rtok // T) == (ctok // T)   # trivially true when tl == T (per-batch grid)
    causal = ctok <= rtok
    valid = same_head & same_seq & causal
    bias = jnp.where(valid, 0.0, NEG_BIG).astype(jnp.float32)
    slab = slab.at[0:nr, MASK_COL:MASK_COL + nr].set(bias)

    # Per-head 0/1 lane mask: row block h keeps lanes [h*d_k, (h+1)*d_k).
    hm = ((jnp.arange(D_MODEL)[None, :] // D_K) == (r[:, None] // tl)).astype(jnp.float32)
    slab = slab.at[0:nr, HM_COL:HM_COL + D_MODEL].set(hm)
    return slab


def _num_grid_steps():
    # v7x has 2 TensorCores/chip: split the batch across them (grid=(B,), "parallel").
    # Single-TC chips (v5e/v6e) keep the collapsed grid=(1,) — extra grid steps there
    # are just a serial loop with per-step overhead.
    try:
        kind = jax.devices()[0].device_kind.lower()
    except Exception:
        return 1
    if "v7" in kind or "tpu7" in kind:
        return B
    return 1


def transformer_block(x, params):
    g = _num_grid_steps()
    tl = BT // g                              # tokens per grid step
    slab = pack_params(params, tl)
    x2 = x.reshape(BT, D_MODEL)               # free row-major flatten outside the kernel

    out2 = pl.pallas_call(
        transformer_block_kernel,
        out_shape=jax.ShapeDtypeStruct((BT, D_MODEL), jnp.float32),
        grid_spec=pltpu.PrefetchScalarGridSpec(
            num_scalar_prefetch=0,
            grid=(g,),
            in_specs=[
                pl.BlockSpec((tl, D_MODEL), lambda i: (i, 0)),          # activations
                pl.BlockSpec((SLAB_ROWS, SLAB_COLS), lambda i: (0, 0)),  # packed params
            ],
            out_specs=pl.BlockSpec((tl, D_MODEL), lambda i: (i, 0)),
        ),
        compiler_params=pltpu.CompilerParams(
            dimension_semantics=("parallel",) if g > 1 else ("arbitrary",)),
    )(x2, slab)

    return out2.reshape(B, T, D_MODEL)


# ---------------- pure-JAX reference (matches PyTorch semantics) ------------
def reference(x, params):
    (wq, bq, wk, bk, wv, bv, wo, bo,
     g1, be1, w1, bf1, w2, bf2, g2, be2) = params

    def ln(z, g, b):
        mu = jnp.mean(z, axis=-1, keepdims=True)
        var = jnp.mean((z - mu) ** 2, axis=-1, keepdims=True)
        return (z - mu) / jnp.sqrt(var + LN_EPS) * g + b

    h = ln(x, g1[0], be1[0])
    q = h @ wq + bq[0]
    k = h @ wk + bk[0]
    v = h @ wv + bv[0]
    qh = q.reshape(B, T, N_HEADS, D_K).transpose(0, 2, 1, 3)
    kh = k.reshape(B, T, N_HEADS, D_K).transpose(0, 2, 1, 3)
    vh = v.reshape(B, T, N_HEADS, D_K).transpose(0, 2, 1, 3)
    scores = jnp.einsum("bhqd,bhkd->bhqk", qh, kh) / (D_K ** 0.5)
    mask = jnp.triu(jnp.ones((T, T), bool), k=1)
    scores = jnp.where(mask[None, None], -jnp.inf, scores)
    attn = jax.nn.softmax(scores, axis=-1)
    o = jnp.einsum("bhqk,bhkd->bhqd", attn, vh)
    o = o.transpose(0, 2, 1, 3).reshape(B, T, D_MODEL)
    x1 = x + (o @ wo + bo[0])
    h2 = ln(x1, g2[0], be2[0])
    f = jnp.maximum(h2 @ w1 + bf1[0], 0.0) @ w2 + bf2[0]
    return x1 + f


def make_params(key):
    ks = jax.random.split(key, 12)
    s = 0.05
    wq = jax.random.normal(ks[0], (D_MODEL, D_MODEL), jnp.float32) * s
    wk = jax.random.normal(ks[1], (D_MODEL, D_MODEL), jnp.float32) * s
    wv = jax.random.normal(ks[2], (D_MODEL, D_MODEL), jnp.float32) * s
    wo = jax.random.normal(ks[3], (D_MODEL, D_MODEL), jnp.float32) * s
    w1 = jax.random.normal(ks[4], (D_MODEL, D_FF), jnp.float32) * s
    w2 = jax.random.normal(ks[5], (D_FF, D_MODEL), jnp.float32) * s
    bq = jax.random.normal(ks[6], (1, D_MODEL), jnp.float32) * s
    bk = jax.random.normal(ks[7], (1, D_MODEL), jnp.float32) * s
    bv = jax.random.normal(ks[8], (1, D_MODEL), jnp.float32) * s
    bo = jax.random.normal(ks[9], (1, D_MODEL), jnp.float32) * s
    bf1 = jax.random.normal(ks[10], (1, D_FF), jnp.float32) * s
    bf2 = jax.random.normal(ks[11], (1, D_MODEL), jnp.float32) * s
    g1 = jnp.ones((1, D_MODEL), jnp.float32)
    be1 = jnp.zeros((1, D_MODEL), jnp.float32)
    g2 = jnp.ones((1, D_MODEL), jnp.float32)
    be2 = jnp.zeros((1, D_MODEL), jnp.float32)
    return (wq, bq, wk, bk, wv, bv, wo, bo, g1, be1, w1, bf1, w2, bf2, g2, be2)


if __name__ == "__main__":
    key = jax.random.PRNGKey(0)
    kx, kp = jax.random.split(key)
    x = jax.random.normal(kx, (B, T, D_MODEL), jnp.float32)
    params = make_params(kp)

    # TODO(synk): nn.Dropout is treated as inference-mode identity (no RNG dropout mask).
    out = transformer_block(x, params)
    out = jax.block_until_ready(out)

    ref = reference(x, params)
    assert out.shape == (B, T, D_MODEL)
    assert jnp.allclose(out, ref, atol=1e-4, rtol=1e-4), "mismatch vs reference"

    print("KERNEL_OK")
</pallas_src>

<mosaic_0001>
module attributes {stable_mosaic.version = 11 : i64} {
  func.func @transformer_block_kernel(%arg0: i32, %arg1: memref<16x32xf32, #tpu.memory_space<vmem>>, %arg2: memref<64x320xf32, #tpu.memory_space<vmem>>, %arg3: memref<16x32xf32, #tpu.memory_space<vmem>>) attributes {dimension_semantics = [#tpu.dimension_semantics<arbitrary>], iteration_bounds = array<i64: 1>, scalar_prefetch = 0 : i64, scratch_operands = 0 : i64, tpu.core_type = #tpu.core_type<tc>, window_params = [{transform_indices = @transform_0, window_bounds = array<i64: 16, 32>}, {pipeline_mode = #tpu.pipeline_mode<synchronous>, transform_indices = @transform_1, window_bounds = array<i64: 64, 320>}, {transform_indices = @transform_2, window_bounds = array<i64: 16, 32>}]} {
    %c0 = arith.constant 0 : index
    %c0_0 = arith.constant 0 : index
    %0 = vector.load %arg1[%c0, %c0_0] : memref<16x32xf32, #tpu.memory_space<vmem>>, vector<16x32xf32>
    %c0_1 = arith.constant 0 : index
    %c0_2 = arith.constant 0 : index
    %1 = vector.load %arg2[%c0_1, %c0_2] : memref<64x320xf32, #tpu.memory_space<vmem>>, vector<32x96xf32>
    %c0_3 = arith.constant 0 : index
    %c96 = arith.constant 96 : index
    %2 = vector.load %arg2[%c0_3, %c96] : memref<64x320xf32, #tpu.memory_space<vmem>>, vector<32x32xf32>
    %c0_4 = arith.constant 0 : index
    %c128 = arith.constant 128 : index
    %3 = vector.load %arg2[%c0_4, %c128] : memref<64x320xf32, #tpu.memory_space<vmem>>, vector<32x64xf32>
    %c0_5 = arith.constant 0 : index
    %c192 = arith.constant 192 : index
    %4 = vector.load %arg2[%c0_5, %c192] : memref<64x320xf32, #tpu.memory_space<vmem>>, vector<64x32xf32>
    %c0_6 = arith.constant 0 : index
    %c224 = arith.constant 224 : index
    %5 = vector.load %arg2[%c0_6, %c224] : memref<64x320xf32, #tpu.memory_space<vmem>>, vector<64x64xf32>
    %c0_7 = arith.constant 0 : index
    %c288 = arith.constant 288 : index
    %6 = vector.load %arg2[%c0_7, %c288] : memref<64x320xf32, #tpu.memory_space<vmem>>, vector<64x32xf32>
    %c32 = arith.constant 32 : index
    %c0_8 = arith.constant 0 : index
    %7 = vector.load %arg2[%c32, %c0_8] : memref<64x320xf32, #tpu.memory_space<vmem>>, vector<4x96xf32>
    %8 = vector.extract_strided_slice %7 {offsets = [0, 0], sizes = [1, 96], strides = [1, 1]} : vector<4x96xf32> to vector<1x96xf32>
    %9 = vector.extract_strided_slice %7 {offsets = [1, 0], sizes = [1, 32], strides = [1, 1]} : vector<4x96xf32> to vector<1x32xf32>
    %10 = vector.extract_strided_slice %7 {offsets = [1, 32], sizes = [1, 32], strides = [1, 1]} : vector<4x96xf32> to vector<1x32xf32>
    %11 = vector.extract_strided_slice %7 {offsets = [1, 64], sizes = [1, 32], strides = [1, 1]} : vector<4x96xf32> to vector<1x32xf32>
    %12 = vector.extract_strided_slice %7 {offsets = [2, 0], sizes = [1, 32], strides = [1, 1]} : vector<4x96xf32> to vector<1x32xf32>
    %13 = vector.extract_strided_slice %7 {offsets = [2, 32], sizes = [1, 32], strides = [1, 1]} : vector<4x96xf32> to vector<1x32xf32>
    %14 = vector.extract_strided_slice %7 {offsets = [2, 64], sizes = [1, 32], strides = [1, 1]} : vector<4x96xf32> to vector<1x32xf32>
    %15 = vector.extract_strided_slice %7 {offsets = [3, 0], sizes = [1, 64], strides = [1, 1]} : vector<4x96xf32> to vector<1x64xf32>
    %cst = arith.constant dense<0.000000e+00> : vector<16xf32>
    %16 = vector.multi_reduction <add>, %0, %cst [1] : vector<16x32xf32> to vector<16xf32>
    %17 = vector.shape_cast %16 : vector<16xf32> to vector<16x1xf32>
    %cst_9 = arith.constant 3.200000e+01 : f32
    %18 = vector.broadcast %cst_9 : f32 to vector<16x1xf32>
    %19 = arith.divf %17, %18 : vector<16x1xf32>
    %20 = vector.broadcast %19 : vector<16x1xf32> to vector<16x32xf32>
    %21 = arith.subf %0, %20 : vector<16x32xf32>
    %22 = arith.mulf %21, %21 : vector<16x32xf32>
    %cst_10 = arith.constant dense<0.000000e+00> : vector<16xf32>
    %23 = vector.multi_reduction <add>, %22, %cst_10 [1] : vector<16x32xf32> to vector<16xf32>
    %24 = vector.shape_cast %23 : vector<16xf32> to vector<16x1xf32>
    %cst_11 = arith.constant 3.200000e+01 : f32
    %25 = vector.broadcast %cst_11 : f32 to vector<16x1xf32>
    %26 = arith.divf %24, %25 : vector<16x1xf32>
    %27 = vector.broadcast %19 : vector<16x1xf32> to vector<16x32xf32>
    %28 = arith.subf %0, %27 : vector<16x32xf32>
    %cst_12 = arith.constant 9.99999974E-6 : f32
    %29 = vector.broadcast %cst_12 : f32 to vector<16x1xf32>
    %30 = arith.addf %26, %29 : vector<16x1xf32>
    %31 = math.rsqrt %30 : vector<16x1xf32>
    %32 = vector.broadcast %31 : vector<16x1xf32> to vector<16x32xf32>
    %33 = arith.mulf %28, %32 : vector<16x32xf32>
    %34 = vector.broadcast %10 : vector<1x32xf32> to vector<16x32xf32>
    %35 = arith.mulf %33, %34 : vector<16x32xf32>
    %36 = vector.broadcast %11 : vector<1x32xf32> to vector<16x32xf32>
    %37 = arith.addf %35, %36 : vector<16x32xf32>
    %cst_13 = arith.constant dense<0.000000e+00> : vector<16x96xf32>
    %38 = tpu.matmul %37, %1, %cst_13 {dimension_numbers = #tpu.dot_dimension_numbers<[1], [0], [0], [1], [0, 0, 1, 1], [], []>} : vector<16x32xf32>, vector<32x96xf32>, vector<16x96xf32> -> vector<16x96xf32>
    %39 = vector.broadcast %8 : vector<1x96xf32> to vector<16x96xf32>
    %40 = arith.addf %38, %39 : vector<16x96xf32>
    %41 = vector.extract_strided_slice %40 {offsets = [0, 0], sizes = [16, 32], strides = [1, 1]} : vector<16x96xf32> to vector<16x32xf32>
    %42 = vector.extract_strided_slice %40 {offsets = [0, 32], sizes = [16, 32], strides = [1, 1]} : vector<16x96xf32> to vector<16x32xf32>
    %43 = vector.extract_strided_slice %40 {offsets = [0, 64], sizes = [16, 32], strides = [1, 1]} : vector<16x96xf32> to vector<16x32xf32>
    %44 = tpu.concatenate %41, %41, %41, %41 in 0 : vector<16x32xf32>, vector<16x32xf32>, vector<16x32xf32>, vector<16x32xf32> -> vector<64x32xf32>
    %45 = tpu.concatenate %42, %42, %42, %42 in 0 : vector<16x32xf32>, vector<16x32xf32>, vector<16x32xf32>, vector<16x32xf32> -> vector<64x32xf32>
    %46 = arith.mulf %45, %6 : vector<64x32xf32>
    %47 = tpu.concatenate %43, %43, %43, %43 in 0 : vector<16x32xf32>, vector<16x32xf32>, vector<16x32xf32>, vector<16x32xf32> -> vector<64x32xf32>
    %48 = arith.mulf %47, %6 : vector<64x32xf32>
    %cst_14 = arith.constant dense<0.000000e+00> : vector<64x64xf32>
    %49 = tpu.matmul %44, %46, %cst_14 {dimension_numbers = #tpu.dot_dimension_numbers<[1], [1], [0], [0], [0, 0, 1, 0], [], []>} : vector<64x32xf32>, vector<64x32xf32>, vector<64x64xf32> -> vector<64x64xf32>
    %50 = arith.addf %49, %5 : vector<64x64xf32>
    %cst_15 = arith.constant dense<0xFF800000> : vector<64xf32>
    %51 = vector.multi_reduction <maximumf>, %50, %cst_15 [1] : vector<64x64xf32> to vector<64xf32>
    %52 = vector.shape_cast %51 : vector<64xf32> to vector<64x1xf32>
    %53 = vector.broadcast %52 : vector<64x1xf32> to vector<64x64xf32>
    %54 = arith.subf %50, %53 : vector<64x64xf32>
    %55 = math.exp %54 : vector<64x64xf32>
    %cst_16 = arith.constant dense<0.000000e+00> : vector<64xf32>
    %56 = vector.multi_reduction <add>, %55, %cst_16 [1] : vector<64x64xf32> to vector<64xf32>
    %57 = vector.shape_cast %56 : vector<64xf32> to vector<64x1xf32>
    %cst_17 = arith.constant dense<0.000000e+00> : vector<64x32xf32>
    %58 = tpu.matmul %55, %48, %cst_17 {dimension_numbers = #tpu.dot_dimension_numbers<[1], [0], [0], [1], [0, 0, 1, 1], [], []>} : vector<64x64xf32>, vector<64x32xf32>, vector<64x32xf32> -> vector<64x32xf32>
    %59 = tpu.reciprocal %57 {approx = true} : vector<64x1xf32> -> vector<64x1xf32>
    %60 = arith.mulf %57, %59 : vector<64x1xf32>
    %cst_18 = arith.constant 2.000000e+00 : f32
    %61 = vector.broadcast %cst_18 : f32 to vector<64x1xf32>
    %62 = arith.subf %61, %60 : vector<64x1xf32>
    %63 = arith.mulf %59, %62 : vector<64x1xf32>
    %64 = vector.broadcast %63 : vector<64x1xf32> to vector<64x32xf32>
    %65 = arith.mulf %58, %64 : vector<64x32xf32>
    %66 = vector.extract_strided_slice %65 {offsets = [0, 0], sizes = [16, 32], strides = [1, 1]} : vector<64x32xf32> to vector<16x32xf32>
    %67 = vector.extract_strided_slice %65 {offsets = [16, 0], sizes = [16, 32], strides = [1, 1]} : vector<64x32xf32> to vector<16x32xf32>
    %68 = arith.addf %66, %67 : vector<16x32xf32>
    %69 = vector.extract_strided_slice %65 {offsets = [32, 0], sizes = [16, 32], strides = [1, 1]} : vector<64x32xf32> to vector<16x32xf32>
    %70 = arith.addf %68, %69 : vector<16x32xf32>
    %71 = vector.extract_strided_slice %65 {offsets = [48, 0], sizes = [16, 32], strides = [1, 1]} : vector<64x32xf32> to vector<16x32xf32>
    %72 = arith.addf %70, %71 : vector<16x32xf32>
    %cst_19 = arith.constant dense<0.000000e+00> : vector<16x32xf32>
    %73 = tpu.matmul %72, %2, %cst_19 {dimension_numbers = #tpu.dot_dimension_numbers<[1], [0], [0], [1], [0, 0, 1, 1], [], []>} : vector<16x32xf32>, vector<32x32xf32>, vector<16x32xf32> -> vector<16x32xf32>
    %74 = vector.broadcast %9 : vector<1x32xf32> to vector<16x32xf32>
    %75 = arith.addf %73, %74 : vector<16x32xf32>
    %76 = arith.addf %0, %75 : vector<16x32xf32>
    %cst_20 = arith.constant dense<0.000000e+00> : vector<16xf32>
    %77 = vector.multi_reduction <add>, %76, %cst_20 [1] : vector<16x32xf32> to vector<16xf32>
    %78 = vector.shape_cast %77 : vector<16xf32> to vector<16x1xf32>
    %cst_21 = arith.constant 3.200000e+01 : f32
    %79 = vector.broadcast %cst_21 : f32 to vector<16x1xf32>
    %80 = arith.divf %78, %79 : vector<16x1xf32>
    %81 = vector.broadcast %80 : vector<16x1xf32> to vector<16x32xf32>
    %82 = arith.subf %76, %81 : vector<16x32xf32>
    %83 = arith.mulf %82, %82 : vector<16x32xf32>
    %cst_22 = arith.constant dense<0.000000e+00> : vector<16xf32>
    %84 = vector.multi_reduction <add>, %83, %cst_22 [1] : vector<16x32xf32> to vector<16xf32>
    %85 = vector.shape_cast %84 : vector<16xf32> to vector<16x1xf32>
    %cst_23 = arith.constant 3.200000e+01 : f32
    %86 = vector.broadcast %cst_23 : f32 to vector<16x1xf32>
    %87 = arith.divf %85, %86 : vector<16x1xf32>
    %88 = vector.broadcast %80 : vector<16x1xf32> to vector<16x32xf32>
    %89 = arith.subf %76, %88 : vector<16x32xf32>
    %cst_24 = arith.constant 9.99999974E-6 : f32
    %90 = vector.broadcast %cst_24 : f32 to vector<16x1xf32>
    %91 = arith.addf %87, %90 : vector<16x1xf32>
    %92 = math.rsqrt %91 : vector<16x1xf32>
    %93 = vector.broadcast %92 : vector<16x1xf32> to vector<16x32xf32>
    %94 = arith.mulf %89, %93 : vector<16x32xf32>
    %95 = vector.broadcast %12 : vector<1x32xf32> to vector<16x32xf32>
    %96 = arith.mulf %94, %95 : vector<16x32xf32>
    %97 = vector.broadcast %13 : vector<1x32xf32> to vector<16x32xf32>
    %98 = arith.addf %96, %97 : vector<16x32xf32>
    %cst_25 = arith.constant dense<0.000000e+00> : vector<16x64xf32>
    %99 = tpu.matmul %98, %3, %cst_25 {dimension_numbers = #tpu.dot_dimension_numbers<[1], [0], [0], [1], [0, 0, 1, 1], [], []>} : vector<16x32xf32>, vector<32x64xf32>, vector<16x64xf32> -> vector<16x64xf32>
    %100 = vector.broadcast %15 : vector<1x64xf32> to vector<16x64xf32>
    %101 = arith.addf %99, %100 : vector<16x64xf32>
    %cst_26 = arith.constant 0.000000e+00 : f32
    %102 = vector.broadcast %cst_26 : f32 to vector<16x64xf32>
    %103 = arith.maximumf %101, %102 : vector<16x64xf32>
    %cst_27 = arith.constant dense<0.000000e+00> : vector<16x32xf32>
    %104 = tpu.matmul %103, %4, %cst_27 {dimension_numbers = #tpu.dot_dimension_numbers<[1], [0], [0], [1], [0, 0, 1, 1], [], []>} : vector<16x64xf32>, vector<64x32xf32>, vector<16x32xf32> -> vector<16x32xf32>
    %105 = vector.broadcast %14 : vector<1x32xf32> to vector<16x32xf32>
    %106 = arith.addf %104, %105 : vector<16x32xf32>
    %107 = arith.addf %76, %106 : vector<16x32xf32>
    %c0_28 = arith.constant 0 : index
    %c0_29 = arith.constant 0 : index
    %108 = vector.load %arg3[%c0_28, %c0_29] : memref<16x32xf32, #tpu.memory_space<vmem>>, vector<16x32xf32>
    tpu.vector_store %arg3[%c0_28, %c0_29], %107 {strides = array<i32>} : memref<16x32xf32, #tpu.memory_space<vmem>>, vector<16x32xf32>,
    return
  }
  func.func @transform_0(%arg0: i32) -> (i32, i32) {
    %c0_i32 = arith.constant 0 : i32
    %c0_i32_0 = arith.constant 0 : i32
    return %arg0, %c0_i32 : i32, i32
  }
  func.func @transform_1(%arg0: i32) -> (i32, i32) {
    %c0_i32 = arith.constant 0 : i32
    %c0_i32_0 = arith.constant 0 : i32
    %c0_i32_1 = arith.constant 0 : i32
    return %c0_i32, %c0_i32_0 : i32, i32
  }
  func.func @transform_2(%arg0: i32) -> (i32, i32) {
    %c0_i32 = arith.constant 0 : i32
    %c0_i32_0 = arith.constant 0 : i32
    return %arg0, %c0_i32 : i32, i32
  }
}

</mosaic_0001>

<bundles_post_ra>
// kernel: tpu_custom_call.1
= control target key start
LH: loop header
LB: loop body
LE: loop exit
PB: predicated region body
PF: predicated region fallthrough
CT: control target
= control target key end

     0   :  { %7 = vsyncpa [#allocation3], 0  ;;  %s1844_s0 = inlined_call_operand.hbm [shape: f32[16,32], index: 0, kind: input, shape index: {}]   ;;  %s1845_s1 = inlined_call_operand.hbm [shape: f32[64,320], index: 1, kind: input, shape index: {}]   ;;  %s1846_s2 = inlined_call_operand.hbm [shape: f32[16,32], index: 2, kind: output, shape index: {}]  }
   0x1   :  { %8 = vsyncpa [#allocation6], 0 }
   0x2   :  { %9 = vsyncpa [#allocation4], 0  ;;  %s1536_s9 = smov [#allocation2]   ;;  %s1464_s13 = scalar_lea.hbm %s1844_s0, 256 }
   0x3   :  { %s15_s10 = sshll.u32 %s1536_s9, 4  ;;  %p1465_p0 = scmp.ne.s32.totalorder %s1844_s0, %s1464_s13  ;;  %s16_s10 = int_to_ptr.vmem [resolvable:$true] %s15_s10 }
   0x4   :  { %p1468_p1 = scmp.lt.u32.totalorder %s1464_s13, %s1844_s0 }
   0x6   :  { %p1470_p2 = pnand %p1468_p1, %p1465_p0 }
   0x8   :  { %1473 = shalt.err (!%p1470_p2)
}
   0x9   :  { %s1474_s18 = scalar_lea.vmem %s16_s10, 256  ;;  %p1479_p4 = scmp.lt.s32.totalorder %s16_s10, %s16_s10 }
   0xa   :  { %p1475_p3 = scmp.ne.s32.totalorder %s16_s10, %s1474_s18  ;;  %p1480_p5 = scmp.lt.s32.totalorder %s1474_s18, %s1474_s18 }
   0xc   :  { %p1481_p6 = por %p1480_p5, %p1479_p4 }
   0xe   :  { %p1482_p7 = pnand %p1481_p6, %p1475_p3 }
  0x10   :  { %1485 = shalt.err (!%p1482_p7)
}
  0x11   :  { %s1537_s19 = smov 128   ;;  %s1538_s20 = smov 8  }
  0x12   :  { %21 = dma.hbm_to_vmem [thread:$0]  %s1844_s0, 256, %s16_s10, [#allocation3], %s1537_s19, %s1537_s19, %s1538_s20  }
  0x13   :  { %s1539_s23 = smov [#allocation5]   ;;  %s1486_s27 = scalar_lea.hbm %s1845_s1, 3072 }
  0x14   :  { %s27_s24 = sshll.u32 %s1539_s23, 4  ;;  %p1487_p8 = scmp.ne.s32.totalorder %s1845_s1, %s1486_s27  ;;  %s28_s24 = int_to_ptr.vmem [resolvable:$true] %s27_s24 }
  0x15   :  { %p1490_p9 = scmp.lt.u32.totalorder %s1486_s27, %s1845_s1 }
  0x17   :  { %p1492_p10 = pnand %p1490_p9, %p1487_p8 }
  0x19   :  { %1495 = shalt.err (!%p1492_p10)
}
  0x1a   :  { %s1496_s4 = scalar_lea.vmem %s28_s24, 3072  ;;  %p1501_p12 = scmp.lt.s32.totalorder %s28_s24, %s28_s24 }
  0x1b   :  { %p1497_p11 = scmp.ne.s32.totalorder %s28_s24, %s1496_s4  ;;  %p1502_p13 = scmp.lt.s32.totalorder %s1496_s4, %s1496_s4 }
  0x1d   :  { %p1503_p0 = por %p1502_p13, %p1501_p12 }
  0x1f   :  { %p1504_p1 = pnand %p1503_p0, %p1497_p11 }
  0x21   :  { %1507 = shalt.err (!%p1504_p1)
}
  0x22   :  { %s1540_s0 = smov 384   ;;  %s1541_s5 = smov 24  }
  0x23   :  { %33 = dma.hbm_to_vmem [thread:$0]  %s1845_s1, 3072, %s28_s24, [#allocation6], %s1540_s0, %s1540_s0, %s1541_s5  }
  0x24   :  { %1530 = dma.done.wait [#allocation3], 256  }
  0x25   :  { %1531 = vsyncadd [#allocation3], 4294967040 }
  0x26   :  { %1532 = dma.done.wait [#allocation6], 3072  }
  0x27   :  { %1533 = vsyncadd [#allocation6], 4294964224  ;;  %vm63_vm0 = vcmask 261120   ;;  %v1588_v0 = vld [vmem:[#allocation2] sm:$0xff]  ;;  %v1590_v1 = vld [vmem:[#allocation2 + $0x8] sm:$0xff]  ;;  %v91_v4 = vlaneseq  ;;  %s1542_s1 = smov 96  }
  0x28   :  { %v64_v2 = vsel %vm63_vm0, %v1588_v0, 0.0  ;;  %v67_v3 = vsel %vm63_vm0, %v1590_v1, 0.0  ;;  %v1598_v6 = vld [vmem:[#allocation5 + $0x60] sm:$0xf]  ;;  %s1543_s8 = smov 64   ;;  %v1614_v20 = vld [vmem:[#allocation5 + $0x18] sm:$0xff]  ;;  %vm1694_vm1 = vmpackc.low %vm63_vm0, %vm63_vm0 }
  0x29   :  { %65 = vadd.xlane.f32.xlu0 %v64_v2  ;;  %v1596_v5 = vshrl.u32 %v91_v4, 7  ;;  %v1612_v19 = vld [vmem:[#allocation5] sm:$0xff]  ;;  %v1618_v22 = vld [vmem:[#allocation5 + $0x30] sm:$0xff]  ;;  %v1620_v23 = vld [vmem:[#allocation5 + $0x48] sm:$0xff]  ;;  %s1544_s9 = smov 32   ;;  %vm430_vm2 = vcmask 523264  }
  0x2a   :  { %v1264_v21 = vpack.c.bf16 %v1614_v20, %v1612_v19  ;;  %v1268_v24 = vpack.c.bf16 %v1620_v23, %v1618_v22  ;;  %v1394_v25 = vpack.i.bf16 %v1614_v20, %v1612_v19  ;;  %v1629_v43 = vld [vmem:[#allocation5 + $0x68] sm:$0xff]  ;;  %v1631_v44 = vld [vmem:[#allocation5 + $0x80] sm:$0xff]  ;;  %v58_v52 = vld [vmem:[#allocation5 + $0x70] sm:$0xff]  ;;  %s1545_s10 = smov [#allocation7]  }
  0x2b   :  { %v93_v7 = vsub.s32 1, %v1596_v5  ;;  %v108_v42 = vsub.s32 0, %v1596_v5  ;;  %v1414_v46 = vpack.i.bf16 %v1631_v44, %v1629_v43  ;;  %v59_v48 = vld [vmem:[#allocation5 + $0x88] sm:$0xff]  ;;  %v54_v53 = vld [vmem:[#allocation5 + $0x10] sm:$0xff]  ;;  %v56_v57 = vld [vmem:[#allocation5 + $0x40] sm:$0xff]  ;;  %s1051_s11 = sshll.u32 %s1545_s10, 4  ;;  %s1052_s11 = int_to_ptr.vmem [resolvable:$true] %s1051_s11 }
  0x2c   :  { %1265 = vmatprep.subr.bf16.mxu0 %v1264_v21  ;;  %v55_v49 = vld [vmem:[#allocation5 + $0x28] sm:$0xff]  ;;  %v57_v58 = vld [vmem:[#allocation5 + $0x58] sm:$0xff]  ;;  %v1648_v62 = vld [vmem:[#allocation5 + $0xb0] sm:$0xff]  ;;  %s1508_s12 = scalar_lea.vmem %s1052_s11, 256  ;;  %p1513_p3 = scmp.lt.s32.totalorder %s1052_s11, %s1052_s11 }
  0x2d   :  { %68 = vadd.xlane.f32.xlu0 %v67_v3  ;;  %v1602_v8 = vrot.slane %v1598_v6, %v93_v7  ;;  %1267 = vmatpush3.bf16.msra.mxu0 %v1264_v21  ;;  %v109_v45 = vrot.slane %v1598_v6, %v108_v42  ;;  %v1646_v61 = vld [vmem:[#allocation5 + $0x98] sm:$0xff]  ;;  %p1509_p2 = scmp.ne.s32.totalorder %s1052_s11, %s1508_s12  ;;  %p1514_p4 = scmp.lt.s32.totalorder %s1508_s12, %s1508_s12 }
  0x2e   :  { %1269 = vmatprep.subr.bf16.mxu0 %v1268_v24  ;;  %v1419_v63 = vpack.i.bf16 %v1648_v62, %v1646_v61 }
  0x2f   :  { %p1515_p5 = por %p1514_p4, %p1513_p3 }
  0x31   :  { %1271 = vmatpush3.bf16.msra.mxu0 %v1268_v24  ;;  %p1516_p6 = pnand %p1515_p5, %p1509_p2 }
  0x43   :  { %96 = vrot.lane.b32.xlu0 %v1602_v8, %s1542_s1 }
  0xb6   :  { %v66_v9 = vpop.xlane.xlu0 %65 }
  0xb7   :  { %v71_v10 = vmul.f32 0.03125, %v66_v9  ;;  %v60_v9 = vld [vmem:[#allocation5 + $0xa0] sm:$0xff] }
  0xb9   :  { %v73_v11 = vsub.f32 %v1588_v0, %v71_v10  ;;  %v61_v10 = vld [vmem:[#allocation5 + $0xb8] sm:$0xff] }
  0xba   :  { %v69_v12 = vpop.xlane.xlu0 %68 }
  0xbb   :  { %v72_v13 = vmul.f32 0.03125, %v69_v12  ;;  %v75_v14 = vmul.f32 %v73_v11, %v73_v11 }
  0xbd   :  { %v74_v15 = vsub.f32 %v1590_v1, %v72_v13  ;;  %v77_v16 = vsel %vm63_vm0, %v75_v14, 0.0 }
  0xbe   :  { %78 = vadd.xlane.f32.xlu1 %v77_v16  ;;  %v97_v33 = vpop.permute.xlu0 %96  ;;  %v1667_v16 = vld [vmem:[#allocation5 + $0x20] sm:$0xff] }
  0xbf   :  { %v76_v17 = vmul.f32 %v74_v15, %v74_v15 }
  0xc1   :  { %v80_v18 = vsel %vm63_vm0, %v76_v17, 0.0  ;;  %v1672_v17 = vld [vmem:[#allocation5 + $0x38] sm:$0xff] }
  0xc2   :  { %81 = vadd.xlane.f32.xlu1 %v80_v18  ;;  %v1677_v18 = vld [vmem:[#allocation5 + $0x50] sm:$0xff] }
  0xd3   :  { %101 = vrot.lane.b32.xlu1 %v1602_v8, %s1543_s8 }
 0x14b   :  { %v79_v26 = vpop.xlane.xlu1 %78 }
 0x14c   :  { %v83_v27 = vmul.f32 0.03125, %v79_v26 }
 0x14e   :  { %v85_v28 = vadd.f32 1e-05, %v83_v27 }
 0x14f   :  { %v82_v29 = vpop.xlane.xlu1 %81 }
 0x150   :  { %1424 = vrsqrt.f32 %v85_v28  ;;  %v84_v30 = vmul.f32 0.03125, %v82_v29 }
 0x152   :  { %v86_v31 = vadd.f32 1e-05, %v84_v30 }
 0x153   :  { %v102_v35 = vpop.permute.xlu1 %101 }
 0x154   :  { %1426 = vrsqrt.f32 %v86_v31 }
 0x15a   :  { %v1425_v32 = vpop.eup %1424 }
 0x15b   :  { %v89_v34 = vmul.f32 %v1425_v32, %v73_v11 }
 0x15d   :  { %v99_v36 = vmul.f32 %v97_v33, %v89_v34 }
 0x15e   :  { %v1427_v37 = vpop.eup %1426 }
 0x15f   :  { %v90_v38 = vmul.f32 %v1427_v37, %v74_v15  ;;  %v104_v39 = vadd.f32 %v102_v35, %v99_v36  ;;  %v1662_v15 = vld [vmem:[#allocation5 + $0x8] sm:$0xff] }
 0x161   :  { %v100_v40 = vmul.f32 %v97_v33, %v90_v38  ;;  %1164 = vmatprep.mubr.msk.f32.mxu0 %vm63_vm0, %v104_v39 }
 0x163   :  { %v105_v41 = vadd.f32 %v102_v35, %v100_v40 }
 0x165   :  { %1165 = vmatmul.mubr.msk.f32.vlgmr.msra.gmra.mrb[0].mxu0 %vm63_vm0, %v105_v41 }
 0x238   :  { %v1166_v47 = vpop.f32.mrb[0].mxu0 }
 0x239   :  { %v1636_v50 = vadd.f32 %v1166_v47, %v109_v45  ;;  %v182_v51 = vpop.f32.mrb[1].mxu0 }
 0x23a   :  { %v1638_v54 = vadd.f32 %v182_v51, %v109_v45 }
 0x23b   :  { %v196_v55 = vmul.f32 %v1636_v50, %v59_v48  ;;  %v192_v56 = vmul.f32 %v1636_v50, %v55_v49  ;;  %v194_v7 = vmul.f32 %v1636_v50, %v57_v58  ;;  %v198_v13 = vmul.f32 %v1636_v50, %v61_v10 }
 0x23c   :  { %1183 = vmatprep.mubr.msk.f32.mxu1 %vm63_vm0, %v1638_v54  ;;  %v195_v59 = vmul.f32 %v1638_v54, %v58_v52  ;;  %v191_v60 = vmul.f32 %v1638_v54, %v54_v53  ;;  %v193_v4 = vmul.f32 %v1638_v54, %v56_v57  ;;  %v197_v12 = vmul.f32 %v1638_v54, %v60_v9 }
 0x23e   :  { %v1364_v2 = vpack.i.bf16 %v196_v55, %v195_v59  ;;  %v1354_v3 = vpack.i.bf16 %v192_v56, %v191_v60  ;;  %v1359_v11 = vpack.i.bf16 %v194_v7, %v193_v4  ;;  %v1369_v14 = vpack.i.bf16 %v198_v13, %v197_v12 }
 0x240   :  { %1365 = vrot.lane.b32.xlu0 %v1364_v2, %s1542_s1  ;;  %1355 = vrot.lane.b32.xlu1 %v1354_v3, %s1542_s1 }
 0x244   :  { %207 = vrot.lane.b32.xlu0 %v54_v53, %s1544_s9  ;;  %1360 = vrot.lane.b32.xlu1 %v1359_v11, %s1542_s1 }
 0x248   :  { %209 = vrot.lane.b32.xlu0 %v55_v49, %s1544_s9  ;;  %1370 = vrot.lane.b32.xlu1 %v1369_v14, %s1542_s1 }
 0x24c   :  { %211 = vrot.lane.b32.xlu0 %v56_v57, %s1544_s9  ;;  %271 = vrot.lane.b32.xlu1 %v1662_v15, %s1544_s9 }
 0x250   :  { %213 = vrot.lane.b32.xlu0 %v57_v58, %s1544_s9  ;;  %273 = vrot.lane.b32.xlu1 %v1667_v16, %s1544_s9 }
 0x254   :  { %215 = vrot.lane.b32.xlu0 %v58_v52, %s1544_s9  ;;  %275 = vrot.lane.b32.xlu1 %v1672_v17, %s1544_s9 }
 0x258   :  { %217 = vrot.lane.b32.xlu0 %v59_v48, %s1544_s9  ;;  %277 = vrot.lane.b32.xlu1 %v1677_v18, %s1544_s9 }
 0x25c   :  { %219 = vrot.lane.b32.xlu0 %v60_v9, %s1544_s9  ;;  %279 = vrot.lane.b32.xlu1 %v1629_v43, %s1544_s9 }
 0x260   :  { %221 = vrot.lane.b32.xlu0 %v61_v10, %s1544_s9  ;;  %281 = vrot.lane.b32.xlu1 %v1631_v44, %s1544_s9 }
 0x264   :  { %283 = vrot.lane.b32.xlu1 %v1646_v61, %s1544_s9 }
 0x268   :  { %285 = vrot.lane.b32.xlu1 %v1648_v62, %s1544_s9 }
 0x2b2   :  { %v1366_v21 = vpop.permute.xlu0 %1365  ;;  %v1356_v24 = vpop.permute.xlu1 %1355 }
 0x2b3   :  { %v1358_v26 = vunpack.i.h.bf16 %v1356_v24  ;;  %v1357_v27 = vunpack.i.l.bf16 %v1356_v24  ;;  %v1368_v37 = vunpack.i.h.bf16 %v1366_v21  ;;  %v1367_v38 = vunpack.i.l.bf16 %v1366_v21 }
 0x2b5   :  { %v1272_v29 = vpack.c.bf16 %v1358_v26, %v1357_v27  ;;  %v1284_v45 = vpack.c.bf16 %v1368_v37, %v1367_v38 }
 0x2b6   :  { %v208_v30 = vpop.permute.xlu0 %207  ;;  %v1361_v31 = vpop.permute.xlu1 %1360 }
 0x2b7   :  { %v1363_v32 = vunpack.i.h.bf16 %v1361_v31  ;;  %v1362_v33 = vunpack.i.l.bf16 %v1361_v31  ;;  %1274 = vmatprep.subr.msk.bf16.mxu1 %vm1694_vm1, %v1272_v29  ;;  %v231_v39 = vmul.f32 %v208_v30, %v1638_v54 }
 0x2b8   :  { %1277 = vmatpush3.bf16.xpose.msk.msra.mxu1 %vm1694_vm1, %v1272_v29 }
 0x2b9   :  { %v1278_v34 = vpack.c.bf16 %v1363_v32, %v1362_v33 }
 0x2ba   :  { %v210_v35 = vpop.permute.xlu0 %209  ;;  %v1371_v36 = vpop.permute.xlu1 %1370 }
 0x2bb   :  { %v232_v40 = vmul.f32 %v210_v35, %v1636_v50  ;;  %1280 = vmatprep.subr.msk.bf16.mxu1 %vm1694_vm1, %v1278_v34  ;;  %v1373_v48 = vunpack.i.h.bf16 %v1371_v36  ;;  %v1372_v49 = vunpack.i.l.bf16 %v1371_v36 }
 0x2bd   :  { %v1374_v41 = vpack.i.bf16 %v232_v40, %v231_v39  ;;  %v1290_v52 = vpack.c.bf16 %v1373_v48, %v1372_v49 }
 0x2be   :  { %v272_v42 = vpop.permute.xlu1 %271  ;;  %v212_v7 = vpop.permute.xlu0 %211 }
 0x2bf   :  { %1375 = vrot.lane.b32.xlu1 %v1374_v41, %s1543_s8  ;;  %v287_v14 = vsel %vm63_vm0, %v272_v42, %v208_v30 }
 0x2c0   :  { %1283 = vmatpush3.bf16.xpose.msk.msra.mxu1 %vm1694_vm1, %v1278_v34 }
 0x2c1   :  { %1286 = vmatprep.subr.msk.bf16.mxu1 %vm1694_vm1, %v1284_v45 }
 0x2c2   :  { %v274_v47 = vpop.permute.xlu1 %273  ;;  %v214_v9 = vpop.permute.xlu0 %213 }
 0x2c3   :  { %v288_v51 = vsel %vm63_vm0, %v274_v47, %v210_v35 }
 0x2c6   :  { %v276_v53 = vpop.permute.xlu1 %275  ;;  %v216_v10 = vpop.permute.xlu0 %215 }
 0x2c7   :  { %v289_v35 = vsel %vm63_vm0, %v276_v53, %v212_v7 }
 0x2c8   :  { %1289 = vmatpush3.bf16.xpose.msk.msra.mxu1 %vm1694_vm1, %v1284_v45 }
 0x2c9   :  { %1292 = vmatprep.subr.msk.bf16.mxu1 %vm1694_vm1, %v1290_v52 }
 0x2ca   :  { %v278_v55 = vpop.permute.xlu1 %277  ;;  %v218_v11 = vpop.permute.xlu0 %217 }
 0x2cb   :  { %v290_v28 = vsel %vm63_vm0, %v278_v55, %v214_v9 }
 0x2ce   :  { %v280_v56 = vpop.permute.xlu1 %279  ;;  %v220_v26 = vpop.permute.xlu0 %219 }
 0x2cf   :  { %v291_v42 = vsel %vm63_vm0, %v280_v56, %v216_v10  ;;  %v236_v56 = vmul.f32 %v218_v11, %v1636_v50 }
 0x2d0   :  { %1295 = vmatpush3.bf16.xpose.msk.msra.mxu1 %vm1694_vm1, %v1290_v52 }
 0x2d2   :  { %v282_v57 = vpop.permute.xlu1 %281  ;;  %v222_v38 = vpop.permute.xlu0 %221 }
 0x2d3   :  { %v292_v34 = vsel %vm63_vm0, %v282_v57, %v218_v11 }
 0x2d6   :  { %v284_v58 = vpop.permute.xlu1 %283 }
 0x2d7   :  { %1184 = vmatmul.mubr.msk.f32.vlgmr.msra.gmra.mrb[0].mxu1 %vm63_vm0, %v1636_v50  ;;  %v293_v55 = vsel %vm63_vm0, %v284_v58, %v220_v26 }
 0x2d8   :  { %1186 = vmatprep.mubr.msk.f32.mxu1 %vm63_vm0, %v1638_v54 }
 0x2da   :  { %v286_v59 = vpop.permute.xlu1 %285 }
 0x2db   :  { %1187 = vmatmul.mubr.msk.f32.gmra.mrb[2].mxu1 %vm63_vm0, %v1636_v50  ;;  %v294_v41 = vsel %vm63_vm0, %v286_v59, %v222_v38 }
 0x2dc   :  { %1189 = vmatprep.mubr.msk.f32.mxu1 %vm63_vm0, %v1638_v54 }
 0x2df   :  { %1190 = vmatmul.mubr.msk.f32.gmra.mrb[4].mxu1 %vm63_vm0, %v1636_v50 }
 0x2e0   :  { %1192 = vmatprep.mubr.msk.f32.mxu1 %vm63_vm0, %v1638_v54 }
 0x2e3   :  { %1193 = vmatmul.mubr.msk.f32.gmra.mrb[6].mxu1 %vm63_vm0, %v1636_v50 }
 0x331   :  { %v1376_v60 = vpop.permute.xlu1 %1375 }
 0x332   :  { %v1378_v2 = vunpack.i.h.bf16 %v1376_v60  ;;  %v1377_v3 = vunpack.i.l.bf16 %v1376_v60 }
 0x334   :  { %v1296_v4 = vpack.c.bf16 %v1378_v2, %v1377_v3  ;;  %v235_v2 = vmul.f32 %v216_v10, %v1638_v54 }
 0x336   :  { %1297 = vmatprep.subr.bf16.mxu0 %v1296_v4  ;;  %v1384_v3 = vpack.i.bf16 %v236_v56, %v235_v2 }
 0x337   :  { %1299 = vmatpush3.bf16.msra.mxu0 %v1296_v4  ;;  %v238_v4 = vmul.f32 %v222_v38, %v1636_v50 }
 0x3aa   :  { %v1185_v12 = vpop.f32.mrb[0].mxu1 }
 0x3ab   :  { %v397_v13 = vadd.f32 %v1185_v12, %v288_v51  ;;  %v391_v21 = vpop.f32.mrb[1].mxu1  ;;  %v237_v12 = vmul.f32 %v220_v26, %v1638_v54 }
 0x3ac   :  { %v392_v24 = vadd.f32 %v391_v21, %v287_v14  ;;  %v234_v14 = vmul.f32 %v214_v9, %v1636_v50  ;;  %v233_v21 = vmul.f32 %v212_v7, %v1638_v54 }
 0x3ad   :  { %v434_v27 = vsel %vm430_vm2, %v397_v13, -inf  ;;  %v1389_v58 = vpack.i.bf16 %v238_v4, %v237_v12 }
 0x3ae   :  { %435 = vmax.xlane.f32.xlu1 %v434_v27  ;;  %v1188_v29 = vpop.f32.mrb[2].mxu1  ;;  %v431_v31 = vsel %vm430_vm2, %v392_v24, -inf  ;;  %v1379_v11 = vpack.i.bf16 %v234_v14, %v233_v21 }
 0x3af   :  { %v407_v32 = vadd.f32 %v1188_v29, %v290_v28  ;;  %v401_v33 = vpop.f32.mrb[3].mxu1  ;;  %432 = vmax.xlane.f32.xlu0 %v431_v31 }
 0x3b0   :  { %v402_v36 = vadd.f32 %v401_v33, %v289_v35 }
 0x3b1   :  { %v440_v30 = vsel %vm430_vm2, %v407_v32, -inf }
 0x3b2   :  { %v1191_v37 = vpop.f32.mrb[4].mxu1  ;;  %v437_v49 = vsel %vm430_vm2, %v402_v36, -inf }
 0x3b3   :  { %v417_v39 = vadd.f32 %v1191_v37, %v292_v34  ;;  %v411_v40 = vpop.f32.mrb[5].mxu1  ;;  %441 = vmax.xlane.f32.xlu0 %v440_v30 }
 0x3b4   :  { %v412_v47 = vadd.f32 %v411_v40, %v291_v42 }
 0x3b5   :  { %v446_v45 = vsel %vm430_vm2, %v417_v39, -inf }
 0x3b6   :  { %447 = vmax.xlane.f32.xlu1 %v446_v45  ;;  %v1194_v48 = vpop.f32.mrb[6].mxu1  ;;  %v443_v53 = vsel %vm430_vm2, %v412_v47, -inf }
 0x3b7   :  { %v427_v51 = vadd.f32 %v1194_v48, %v294_v41  ;;  %v421_v52 = vpop.f32.mrb[7].mxu1  ;;  %438 = vmax.xlane.f32.xlu0 %v437_v49 }
 0x3b8   :  { %v422_v57 = vadd.f32 %v421_v52, %v293_v55 }
 0x3b9   :  { %v452_v59 = vsel %vm430_vm2, %v427_v51, -inf }
 0x3ba   :  { %v449_v60 = vsel %vm430_vm2, %v422_v57, -inf }
 0x3bb   :  { %444 = vmax.xlane.f32.xlu0 %v443_v53 }
 0x3bf   :  { %453 = vmax.xlane.f32.xlu0 %v452_v59 }
 0x3c3   :  { %450 = vmax.xlane.f32.xlu0 %v449_v60 }
 0x3c7   :  { %1385 = vrot.lane.b32.xlu1 %v1384_v3, %s1543_s8 }
 0x3cb   :  { %1390 = vrot.lane.b32.xlu1 %v1389_v58, %s1543_s8 }
 0x3d9   :  { %1380 = vrot.lane.b32.xlu0 %v1379_v11, %s1543_s8 }
 0x43b   :  { %v436_v27 = vpop.xlane.xlu1 %435 }
 0x43c   :  { %v456_v10 = vsub.f32 %v397_v13, %v436_v27  ;;  %v433_v28 = vpop.xlane.xlu0 %432 }
 0x43d   :  { %v455_v29 = vsub.f32 %v392_v24, %v433_v28 }
 0x43e   :  { %v465_v31 = vmul.f32 1.442695, %v456_v10 }
 0x43f   :  { %v463_v33 = vmul.f32 1.442695, %v455_v29 }
 0x440   :  { %1428 = vpow2.f32 %v465_v31  ;;  %v442_v26 = vpop.xlane.xlu0 %441 }
 0x441   :  { %1430 = vpow2.f32 %v463_v33  ;;  %v458_v34 = vsub.f32 %v407_v32, %v442_v26 }
 0x443   :  { %v469_v35 = vmul.f32 1.442695, %v458_v34  ;;  %v448_v30 = vpop.xlane.xlu1 %447 }
 0x444   :  { %v460_v37 = vsub.f32 %v417_v39, %v448_v30  ;;  %v439_v38 = vpop.xlane.xlu0 %438 }
 0x445   :  { %1432 = vpow2.f32 %v469_v35  ;;  %v457_v50 = vsub.f32 %v402_v36, %v439_v38  ;;  %v1399_v35 = vpack.i.bf16 %v1620_v23, %v1618_v22 }
 0x446   :  { %v473_v54 = vmul.f32 1.442695, %v460_v37 }
 0x447   :  { %v467_v7 = vmul.f32 1.442695, %v457_v50  ;;  %v1386_v49 = vpop.permute.xlu1 %1385 }
 0x448   :  { %1434 = vpow2.f32 %v473_v54  ;;  %v445_v9 = vpop.xlane.xlu0 %444  ;;  %v1388_v2 = vunpack.i.h.bf16 %v1386_v49 }
 0x449   :  { %1436 = vpow2.f32 %v467_v7  ;;  %v459_v13 = vsub.f32 %v412_v47, %v445_v9 }
 0x44a   :  { %v1429_v40 = vpop.eup %1428 }
 0x44b   :  { %v1431_v24 = vpop.eup %1430  ;;  %v471_v41 = vmul.f32 1.442695, %v459_v13  ;;  %v482_v42 = vsel %vm430_vm2, %v1429_v40, 0.0  ;;  %v1391_v14 = vpop.permute.xlu1 %1390 }
 0x44c   :  { %483 = vadd.xlane.f32.xlu0 %v482_v42  ;;  %1211 = vmatprep.mubr.msk.f32.mxu0 %vm430_vm2, %v1431_v24  ;;  %v454_v32 = vpop.xlane.xlu0 %453  ;;  %v479_v39 = vsel %vm430_vm2, %v1431_v24, 0.0  ;;  %v1393_v10 = vunpack.i.h.bf16 %v1391_v14  ;;  %v1392_v28 = vunpack.i.l.bf16 %v1391_v14 }
 0x44d   :  { %1438 = vpow2.f32 %v471_v41  ;;  %v462_v45 = vsub.f32 %v427_v51, %v454_v32  ;;  %480 = vadd.xlane.f32.xlu1 %v479_v39  ;;  %v1387_v51 = vunpack.i.l.bf16 %v1386_v49 }
 0x44e   :  { %v1308_v33 = vpack.c.bf16 %v1393_v10, %v1392_v28 }
 0x44f   :  { %v1433_v36 = vpop.eup %1432  ;;  %v477_v48 = vmul.f32 1.442695, %v462_v45  ;;  %v1304_v27 = vpack.c.bf16 %v1388_v2, %v1387_v51 }
 0x450   :  { %v451_v52 = vpop.xlane.xlu0 %450  ;;  %v488_v47 = vsel %vm430_vm2, %v1433_v36, 0.0 }
 0x451   :  { %1440 = vpow2.f32 %v477_v48  ;;  %v461_v53 = vsub.f32 %v422_v57, %v451_v52  ;;  %489 = vadd.xlane.f32.xlu1 %v488_v47 }
 0x452   :  { %v1435_v55 = vpop.eup %1434 }
 0x453   :  { %v1437_v59 = vpop.eup %1436  ;;  %v475_v56 = vmul.f32 1.442695, %v461_v53  ;;  %v494_v60 = vsel %vm430_vm2, %v1435_v55, 0.0 }
 0x454   :  { %v1381_v3 = vpop.permute.xlu0 %1380  ;;  %v485_v4 = vsel %vm430_vm2, %v1437_v59, 0.0 }
 0x455   :  { %1442 = vpow2.f32 %v475_v56  ;;  %v1383_v12 = vunpack.i.h.bf16 %v1381_v3  ;;  %v1382_v58 = vunpack.i.l.bf16 %v1381_v3  ;;  %495 = vadd.xlane.f32.xlu1 %v494_v60  ;;  %486 = vadd.xlane.f32.xlu0 %v485_v4 }
 0x457   :  { %v1439_v21 = vpop.eup %1438  ;;  %v1300_v11 = vpack.c.bf16 %v1383_v12, %v1382_v58 }
 0x458   :  { %v491_v57 = vsel %vm430_vm2, %v1439_v21, 0.0 }
 0x459   :  { %492 = vadd.xlane.f32.xlu0 %v491_v57  ;;  %1301 = vmatprep.subr.bf16.mxu0 %v1300_v11 }
 0x45a   :  { %1303 = vmatpush3.bf16.msra.mxu0 %v1300_v11 }
 0x45b   :  { %v1441_v29 = vpop.eup %1440  ;;  %1305 = vmatprep.subr.bf16.mxu0 %v1304_v27 }
 0x45c   :  { %v500_v31 = vsel %vm430_vm2, %v1441_v29, 0.0 }
 0x45d   :  { %501 = vadd.xlane.f32.xlu1 %v500_v31 }
 0x45e   :  { %1307 = vmatpush3.bf16.msra.mxu0 %v1304_v27 }
 0x45f   :  { %v1443_v26 = vpop.eup %1442  ;;  %1309 = vmatprep.subr.bf16.mxu0 %v1308_v33 }
 0x460   :  { %v497_v34 = vsel %vm430_vm2, %v1443_v26, 0.0 }
 0x461   :  { %498 = vadd.xlane.f32.xlu0 %v497_v34 }
 0x462   :  { %1311 = vmatpush3.bf16.msra.mxu0 %v1308_v33 }
 0x465   :  { %1212 = vmatmul.mubr.msk.f32.vlgmr.msra.gmra.mrb[2].mxu0 %vm430_vm2, %v1429_v40 }
 0x466   :  { %1214 = vmatprep.mubr.msk.f32.mxu0 %vm430_vm2, %v1437_v59 }
 0x469   :  { %1215 = vmatmul.mubr.msk.f32.gmra.mrb[4].mxu0 %vm430_vm2, %v1433_v36 }
 0x46a   :  { %1217 = vmatprep.mubr.msk.f32.mxu0 %vm430_vm2, %v1439_v21 }
 0x46d   :  { %1218 = vmatmul.mubr.msk.f32.gmra.mrb[6].mxu0 %vm430_vm2, %v1435_v55 }
 0x46e   :  { %1220 = vmatprep.mubr.msk.f32.mxu0 %vm430_vm2, %v1443_v26  ;;  %1400 = vrot.lane.b32.xlu1 %v1399_v35, %s1544_s9 }
 0x471   :  { %1221 = vmatmul.mubr.msk.f32.gmra.mrb[8].mxu0 %vm430_vm2, %v1441_v29 }
 0x477   :  { %1395 = vrot.lane.b32.xlu0 %v1394_v25, %s1544_s9 }
 0x4d9   :  { %v484_v37 = vpop.xlane.xlu0 %483 }
 0x4da   :  { %v481_v30 = vpop.xlane.xlu1 %480  ;;  %1444 = vrcp.f32 %v484_v37 }
 0x4db   :  { %1446 = vrcp.f32 %v481_v30 }
 0x4de   :  { %v490_v38 = vpop.xlane.xlu1 %489 }
 0x4df   :  { %1448 = vrcp.f32 %v490_v38 }
 0x4e2   :  { %v487_v50 = vpop.xlane.xlu0 %486  ;;  %v496_v54 = vpop.xlane.xlu1 %495 }
 0x4e3   :  { %1450 = vrcp.f32 %v487_v50 }
 0x4e4   :  { %1452 = vrcp.f32 %v496_v54  ;;  %v1445_v19 = vpop.eup %1444 }
 0x4e5   :  { %v1447_v20 = vpop.eup %1446  ;;  %v673_v25 = vmul.f32 %v1445_v19, %v484_v37 }
 0x4e6   :  { %v493_v7 = vpop.xlane.xlu0 %492  ;;  %v672_v36 = vmul.f32 %v1447_v20, %v481_v30 }
 0x4e7   :  { %1454 = vrcp.f32 %v493_v7  ;;  %v681_v49 = vsub.f32 2.0, %v673_v25 }
 0x4e8   :  { %v680_v53 = vsub.f32 2.0, %v672_v36 }
 0x4e9   :  { %v1449_v45 = vpop.eup %1448  ;;  %v689_v2 = vmul.f32 %v1445_v19, %v681_v49 }
 0x4ea   :  { %v502_v22 = vpop.xlane.xlu1 %501  ;;  %v675_v52 = vmul.f32 %v1449_v45, %v490_v38  ;;  %v688_v58 = vmul.f32 %v1447_v20, %v680_v53 }
 0x4eb   :  { %1456 = vrcp.f32 %v502_v22 }
 0x4ec   :  { %v683_v56 = vsub.f32 2.0, %v675_v52 }
 0x4ed   :  { %v1451_v48 = vpop.eup %1450 }
 0x4ee   :  { %v499_v23 = vpop.xlane.xlu0 %498  ;;  %v1401_v9 = vpop.permute.xlu1 %1400  ;;  %v674_v55 = vmul.f32 %v1451_v48, %v487_v50  ;;  %v691_v28 = vmul.f32 %v1449_v45, %v683_v56 }
 0x4ef   :  { %v1403_v13 = vunpack.i.h.bf16 %v1401_v9  ;;  %v1402_v40 = vunpack.i.l.bf16 %v1401_v9  ;;  %1458 = vrcp.f32 %v499_v23  ;;  %v1453_v47 = vpop.eup %1452 }
 0x4f0   :  { %v677_v60 = vmul.f32 %v1453_v47, %v496_v54  ;;  %v682_v4 = vsub.f32 2.0, %v674_v55 }
 0x4f1   :  { %v1316_v39 = vpack.c.bf16 %v1403_v13, %v1402_v40  ;;  %v1455_v59 = vpop.eup %1454 }
 0x4f2   :  { %v1396_v24 = vpop.permute.xlu0 %1395  ;;  %v676_v51 = vmul.f32 %v1455_v59, %v493_v7  ;;  %v685_v27 = vsub.f32 2.0, %v677_v60  ;;  %v690_v26 = vmul.f32 %v1451_v48, %v682_v4 }
 0x4f3   :  { %v1398_v41 = vunpack.i.h.bf16 %v1396_v24  ;;  %v1397_v42 = vunpack.i.l.bf16 %v1396_v24 }
 0x4f4   :  { %v684_v29 = vsub.f32 2.0, %v676_v51  ;;  %v693_v50 = vmul.f32 %v1453_v47, %v685_v27  ;;  %v1404_v27 = vpack.i.bf16 %v1667_v16, %v1662_v15 }
 0x4f5   :  { %v1312_v32 = vpack.c.bf16 %v1398_v41, %v1397_v42  ;;  %v1457_v3 = vpop.eup %1456 }
 0x4f6   :  { %v679_v10 = vmul.f32 %v1457_v3, %v502_v22  ;;  %v692_v13 = vmul.f32 %v1455_v59, %v684_v29 }
 0x4f7   :  { %1313 = vmatprep.subr.bf16.mxu0 %v1312_v32 }
 0x4f8   :  { %1315 = vmatpush3.bf16.msra.mxu0 %v1312_v32  ;;  %v687_v37 = vsub.f32 2.0, %v679_v10  ;;  %v1409_v10 = vpack.i.bf16 %v1677_v18, %v1672_v17 }
 0x4f9   :  { %1317 = vmatprep.subr.bf16.mxu0 %v1316_v39  ;;  %v1459_v14 = vpop.eup %1458 }
 0x4fa   :  { %v678_v31 = vmul.f32 %v1459_v14, %v499_v23  ;;  %v695_v22 = vmul.f32 %v1457_v3, %v687_v37 }
 0x4fc   :  { %1319 = vmatpush3.bf16.msra.mxu0 %v1316_v39  ;;  %v686_v54 = vsub.f32 2.0, %v678_v31 }
 0x4fe   :  { %v694_v23 = vmul.f32 %v1459_v14, %v686_v54  ;;  %v837_v14 = vsub.s32 2, %v1596_v5 }
 0x538   :  { %v1213_v12 = vpop.f32.mrb[2].mxu0 }
 0x539   :  { %v697_v21 = vmul.f32 %v1213_v12, %v689_v2  ;;  %v625_v11 = vpop.f32.mrb[3].mxu0 }
 0x53a   :  { %v696_v57 = vmul.f32 %v688_v58, %v625_v11  ;;  %v1320_v11 = vpack.c.bf16 %v1667_v16, %v1662_v15 }
 0x53c   :  { %v1216_v33 = vpop.f32.mrb[4].mxu0  ;;  %1321 = vmatprep.subr.bf16.mxu0 %v1320_v11 }
 0x53d   :  { %v699_v34 = vmul.f32 %v1216_v33, %v691_v28  ;;  %v635_v35 = vpop.f32.mrb[5].mxu0 }
 0x53e   :  { %v698_v30 = vmul.f32 %v690_v26, %v635_v35 }
 0x53f   :  { %v705_v38 = vadd.f32 %v699_v34, %v697_v21  ;;  %v838_v21 = vrot.slane %v1598_v6, %v837_v14 }
 0x540   :  { %v704_v7 = vadd.f32 %v698_v30, %v696_v57  ;;  %v1219_v9 = vpop.f32.mrb[6].mxu0  ;;  %v1324_v57 = vpack.c.bf16 %v1677_v18, %v1672_v17 }
 0x541   :  { %v701_v40 = vmul.f32 %v1219_v9, %v693_v50  ;;  %v645_v24 = vpop.f32.mrb[7].mxu0 }
 0x542   :  { %v700_v41 = vmul.f32 %v692_v13, %v645_v24 }
 0x543   :  { %v707_v42 = vadd.f32 %v705_v38, %v701_v40 }
 0x544   :  { %v706_v32 = vadd.f32 %v704_v7, %v700_v41  ;;  %v1222_v39 = vpop.f32.mrb[8].mxu0 }
 0x545   :  { %v703_v19 = vmul.f32 %v1222_v39, %v695_v22  ;;  %v655_v20 = vpop.f32.mrb[9].mxu0  ;;  %v849_v39 = vsub.s32 3, %v1596_v5 }
 0x546   :  { %v702_v25 = vmul.f32 %v694_v23, %v655_v20 }
 0x547   :  { %v709_v45 = vadd.f32 %v707_v42, %v703_v19  ;;  %v850_v23 = vrot.slane %v1598_v6, %v849_v39 }
 0x548   :  { %v708_v36 = vadd.f32 %v706_v32, %v702_v25 }
 0x54a   :  { %1231 = vmatprep.mubr.msk.f32.mxu0 %vm63_vm0, %v708_v36 }
 0x54b   :  { %1232 = vmatmul.mubr.msk.f32.vlgmr.msra.gmra.mrb[10].mxu0 %vm63_vm0, %v709_v45 }
 0x54c   :  { %1323 = vmatpush3.bf16.msra.mxu0 %v1320_v11 }
 0x54d   :  { %1325 = vmatprep.subr.bf16.mxu0 %v1324_v57 }
 0x550   :  { %1327 = vmatpush3.bf16.msra.mxu0 %v1324_v57 }
 0x61e   :  { %v1233_v48 = vpop.f32.mrb[10].mxu0 }
 0x61f   :  { %v804_v49 = vadd.f32 %v1233_v48, %v1602_v8  ;;  %v798_v52 = vpop.f32.mrb[11].mxu0 }
 0x620   :  { %v799_v47 = vadd.f32 %v798_v52, %v1602_v8 }
 0x621   :  { %v1784_v53 = vadd.f32 %v804_v49, %v1590_v1 }
 0x622   :  { %v1787_v55 = vadd.f32 %v799_v47, %v1588_v0 }
 0x623   :  { %v812_v59 = vsel %vm63_vm0, %v1784_v53, 0.0 }
 0x624   :  { %813 = vadd.xlane.f32.xlu0 %v812_v59  ;;  %v809_v56 = vsel %vm63_vm0, %v1787_v55, 0.0 }
 0x625   :  { %810 = vadd.xlane.f32.xlu1 %v809_v56 }
 0x6b1   :  { %v814_v60 = vpop.xlane.xlu0 %813 }
 0x6b2   :  { %v816_v2 = vmul.f32 0.03125, %v814_v60  ;;  %v811_v3 = vpop.xlane.xlu1 %810 }
 0x6b3   :  { %v815_v4 = vmul.f32 0.03125, %v811_v3 }
 0x6b4   :  { %v818_v8 = vsub.f32 %v1784_v53, %v816_v2 }
 0x6b5   :  { %v817_v1 = vsub.f32 %v1787_v55, %v815_v4 }
 0x6b6   :  { %v820_v51 = vmul.f32 %v818_v8, %v818_v8 }
 0x6b7   :  { %v819_v12 = vmul.f32 %v817_v1, %v817_v1 }
 0x6b8   :  { %v824_v0 = vsel %vm63_vm0, %v820_v51, 0.0 }
 0x6b9   :  { %825 = vadd.xlane.f32.xlu1 %v824_v0  ;;  %v821_v58 = vsel %vm63_vm0, %v819_v12, 0.0 }
 0x6ba   :  { %822 = vadd.xlane.f32.xlu0 %v821_v58 }
 0x6ca   :  { %1405 = vrot.lane.b32.xlu1 %v1404_v27, %s1543_s8 }
 0x6ce   :  { %1410 = vrot.lane.b32.xlu1 %v1409_v10, %s1543_s8 }
 0x6d0   :  { %842 = vrot.lane.b32.xlu0 %v838_v21, %s1542_s1 }
 0x6d2   :  { %1415 = vrot.lane.b32.xlu1 %v1414_v46, %s1543_s8 }
 0x6d4   :  { %1420 = vrot.lane.b32.xlu0 %v1419_v63, %s1543_s8 }
 0x6d6   :  { %958 = vrot.lane.b32.xlu1 %v838_v21, %s1543_s8 }
 0x746   :  { %v826_v61 = vpop.xlane.xlu1 %825 }
 0x747   :  { %v828_v62 = vmul.f32 0.03125, %v826_v61  ;;  %v823_v63 = vpop.xlane.xlu0 %822 }
 0x748   :  { %v827_v28 = vmul.f32 0.03125, %v823_v63 }
 0x749   :  { %v830_v29 = vadd.f32 1e-05, %v828_v62 }
 0x74a   :  { %v829_v15 = vadd.f32 1e-05, %v827_v28  ;;  %v1406_v31 = vpop.permute.xlu1 %1405 }
 0x74b   :  { %1460 = vrsqrt.f32 %v830_v29  ;;  %v843_v16 = vpop.permute.xlu0 %842  ;;  %v1408_v17 = vunpack.i.h.bf16 %v1406_v31  ;;  %v1407_v18 = vunpack.i.l.bf16 %v1406_v31 }
 0x74c   :  { %1462 = vrsqrt.f32 %v829_v15 }
 0x74d   :  { %v1328_v26 = vpack.c.bf16 %v1408_v17, %v1407_v18 }
 0x74e   :  { %v1411_v43 = vpop.permute.xlu1 %1410 }
 0x74f   :  { %v1421_v44 = vpop.permute.xlu0 %1420  ;;  %v1413_v30 = vunpack.i.h.bf16 %v1411_v43  ;;  %v1412_v37 = vunpack.i.l.bf16 %v1411_v43  ;;  %1329 = vmatprep.subr.bf16.mxu1 %v1328_v26 }
 0x750   :  { %1331 = vmatpush3.bf16.msra.mxu1 %v1328_v26  ;;  %v1423_v7 = vunpack.i.h.bf16 %v1421_v44  ;;  %v1422_v9 = vunpack.i.l.bf16 %v1421_v44 }
 0x751   :  { %v1332_v54 = vpack.c.bf16 %v1413_v30, %v1412_v37 }
 0x752   :  { %v1416_v13 = vpop.permute.xlu1 %1415  ;;  %v1340_v32 = vpack.c.bf16 %v1423_v7, %v1422_v9 }
 0x753   :  { %v1418_v24 = vunpack.i.h.bf16 %v1416_v13  ;;  %v1417_v41 = vunpack.i.l.bf16 %v1416_v13  ;;  %1333 = vmatprep.subr.bf16.mxu1 %v1332_v54 }
 0x754   :  { %1335 = vmatpush3.bf16.msra.mxu1 %v1332_v54 }
 0x755   :  { %v1461_v33 = vpop.eup %1460  ;;  %v1336_v22 = vpack.c.bf16 %v1418_v24, %v1417_v41 }
 0x756   :  { %v1463_v34 = vpop.eup %1462  ;;  %v834_v35 = vmul.f32 %v1461_v33, %v818_v8  ;;  %v959_v49 = vpop.permute.xlu1 %958 }
 0x757   :  { %v833_v46 = vmul.f32 %v1463_v34, %v817_v1  ;;  %1337 = vmatprep.subr.bf16.mxu1 %v1336_v22 }
 0x758   :  { %v840_v38 = vmul.f32 %v838_v21, %v834_v35  ;;  %1339 = vmatpush3.bf16.msra.mxu1 %v1336_v22 }
 0x759   :  { %v839_v50 = vmul.f32 %v838_v21, %v833_v46  ;;  %1341 = vmatprep.subr.bf16.mxu1 %v1340_v32 }
 0x75a   :  { %v846_v42 = vadd.f32 %v843_v16, %v840_v38 }
 0x75b   :  { %v845_v40 = vadd.f32 %v843_v16, %v839_v50 }
 0x75c   :  { %1343 = vmatpush3.bf16.msra.mxu1 %v1340_v32 }
 0x75d   :  { %1242 = vmatprep.mubr.msk.f32.mxu0 %vm63_vm0, %v845_v40 }
 0x75e   :  { %1243 = vmatmul.mubr.msk.f32.vlgmr.msra.gmra.mrb[12].mxu0 %vm63_vm0, %v846_v42 }
 0x831   :  { %v1244_v19 = vpop.f32.mrb[12].mxu0 }
 0x832   :  { %v929_v20 = vadd.f32 %v1244_v19, %v850_v23  ;;  %v923_v25 = vpop.f32.mrb[13].mxu0 }
 0x833   :  { %v924_v45 = vadd.f32 %v923_v25, %v850_v23 }
 0x834   :  { %v933_v48 = vmax.f32 %v929_v20, 0.0 }
 0x835   :  { %v932_v36 = vmax.f32 %v924_v45, 0.0 }
 0x837   :  { %1261 = vmatprep.mubr.msk.f32.mxu1 %vm430_vm2, %v932_v36 }
 0x838   :  { %1262 = vmatmul.mubr.msk.f32.vlgmr.msra.gmra.mrb[8].mxu1 %vm430_vm2, %v933_v48 }
 0x90b   :  { %v1263_v52 = vpop.f32.mrb[8].mxu1 }
 0x90c   :  { %v1039_v47 = vadd.f32 %v1263_v52, %v959_v49  ;;  %v1033_v59 = vpop.f32.mrb[9].mxu1 }
 0x90d   :  { %v1034_v56 = vadd.f32 %v1033_v59, %v959_v49 }
 0x90e   :  { %v1043_v5 = vadd.f32 %v1039_v47, %v1784_v53 }
 0x90f   :  { %v1042_v6 = vadd.f32 %v1034_v56, %v1787_v55 }
 0x910   :  { %1045 = vst.msk [vmem:[#allocation7 + $0x8] sm:$0xff] %vm63_vm0, %v1043_v5 }
 0x911   :  { %1044 = vst.msk [vmem:[#allocation7] sm:$0xff] %vm63_vm0, %v1042_v6 }
 0x912   :  { %1519 = shalt.err (!%p1516_p6)
}
 0x913   :  { %s1520_s15 = scalar_lea.hbm %s1846_s2, 256 }
 0x914   :  { %p1521_p7 = scmp.ne.s32.totalorder %s1846_s2, %s1520_s15  ;;  %p1524_p8 = scmp.lt.u32.totalorder %s1520_s15, %s1846_s2 }
 0x916   :  { %p1526_p9 = pnand %p1524_p8, %p1521_p7 }
 0x918   :  { %1529 = shalt.err (!%p1526_p9)
}
 0x919   :  { %1057 = dma.vmem_to_hbm [thread:$0]  %s1052_s11, 256, %s1846_s2, [#allocation4], %s1537_s19, %s1537_s19, %s1538_s20  }
 0x91a   :  { %1534 = dma.done.wait [#allocation4], 256  }
 0x91b   :  { %1535 = vsyncadd [#allocation4], 4294967040 }
 0x91c   :  { %1061 = vsyncpa [#allocation3], 1 }
 0x91d   :  { %1062 = vsyncpa [#allocation6], 1 }
 0x91e   :  { %1063 = vsyncpa [#allocation4], 1 }

</bundles_post_ra>
